<compile_context>
chip_gen: v5e
topology: v5e:2x2
jax: 0.10.0
libtpu: 0.0.40
codegen_flags: <defaults>
</compile_context>

<pallas_src>
import jax
import jax.numpy as jnp
import numpy as np
from jax import lax
from jax.experimental import pallas as pl
from jax.experimental.pallas import tpu as pltpu

# ---- module "parameters" (deterministic, from __init__) ---------------------
NUM_BINS = 32
MINVAL = 0.0
MAXVAL = 1.0
SIGMA_RATIO = 1.0
_BIN_STEP = (MAXVAL - MINVAL) / (NUM_BINS - 1)          # mean(diff(bin_centers))
_SIGMA = _BIN_STEP * SIGMA_RATIO
PRETERM = 1.0 / (2.0 * _SIGMA ** 2)                     # 1 / (2 sigma^2)


# ---- kernel ------------------------------------------------------------------
def _mi_pab_kernel(x_ref, pab_ref):
    """Accumulates the un-normalized joint soft histogram pab (32, 32).

    x_ref   : (2, TILE_N)  row 0 = y_true voxels, row 1 = y_pred voxels
    pab_ref : (32, 32)     output block, resident across the inner grid axis
    """
    ti = pl.program_id(2)

    @pl.when(ti == 0)
    def _():
        pab_ref[...] = jnp.zeros_like(pab_ref)

    # Bin centers as a (NUM_BINS, 1) column (bins -> sublanes, voxels -> lanes).
    # int32 iota + cast (float iota lowering is less robust in Mosaic).
    vbc = (MINVAL + _BIN_STEP *
           lax.broadcasted_iota(jnp.int32, (NUM_BINS, 1), 0).astype(jnp.float32))

    x = jnp.clip(x_ref[...], 0.0, MAXVAL)                 # (2, TILE_N)
    yt = x[0:1, :]                                        # (1, TILE_N)
    yp = x[1:2, :]                                        # (1, TILE_N)

    def soft_hist(y):
        # Gaussian soft-histogram assignment, normalized per voxel over bins.
        w = jnp.exp(-PRETERM * jnp.square(y - vbc))       # (NUM_BINS, TILE_N)
        s = jnp.sum(w, axis=0, keepdims=True)             # (1, TILE_N)
        inv = pl.reciprocal(s, approx=True)               # EUP slot
        inv = inv * (2.0 - s * inv)                       # 1 Newton step (cheap, (1,TILE_N))
        return w * inv                                    # broadcast multiply, no divide

    ia = soft_hist(yt)                                    # (NUM_BINS, TILE_N)
    ib = soft_hist(yp)                                    # (NUM_BINS, TILE_N)

    # pab[i, j] += sum_n ia[i, n] * ib[j, n]
    # single bf16 MXU pass, f32 accumulation (contraction over the lane axis).
    pab_ref[...] += lax.dot_general(
        ia.astype(jnp.bfloat16), ib.astype(jnp.bfloat16),
        (((1,), (1,)), ((), ())),
        preferred_element_type=jnp.float32)


# ---- wrapper -----------------------------------------------------------------
def mutual_information(y_true, y_pred, *, tile_n=8192, num_chunks=None):
    """Returns -MI(y_true, y_pred), matching MutualInformation.forward."""
    b = y_true.shape[0]
    yt = y_true.reshape(b, -1).astype(jnp.float32)
    yp = y_pred.reshape(b, -1).astype(jnp.float32)
    n = yt.shape[1]
    assert n % 128 == 0, n

    # Largest lane-aligned tile that divides N.  8K voxels keeps the
    # (32, TILE_N) f32 intermediates well inside the scoped-VMEM limit on
    # every chip (v5e/v6e 128 MiB, v7x 64 MiB physical) while amortizing the
    # ~0.35 us per-grid-step overhead.
    tile_n = max(128, min(tile_n, n))
    tile_n -= tile_n % 128
    while n % tile_n != 0:
        tile_n -= 128
    assert tile_n >= 128 and n % tile_n == 0

    total_tiles = n // tile_n
    if num_chunks is None:
        # With B == 1 add a parallel voxel-chunk axis so both TensorCores of a
        # megacore part (v7x) stay busy; partial pab tiles are summed in JAX.
        num_chunks = 2 if (b == 1 and total_tiles % 2 == 0) else 1
    assert total_tiles % num_chunks == 0
    tiles_per_chunk = total_tiles // num_chunks

    # One (B, 2, N) array -> a single input DMA per grid step.
    x = jnp.stack([yt, yp], axis=1)

    pab_raw = pl.pallas_call(
        _mi_pab_kernel,
        out_shape=jax.ShapeDtypeStruct(
            (b, num_chunks, NUM_BINS, NUM_BINS), jnp.float32),
        grid_spec=pltpu.PrefetchScalarGridSpec(
            num_scalar_prefetch=0,
            grid=(b, num_chunks, tiles_per_chunk),
            in_specs=[
                pl.BlockSpec(
                    (None, 2, tile_n),
                    lambda bi, ci, ti: (bi, 0, ci * tiles_per_chunk + ti)),
            ],
            out_specs=pl.BlockSpec(
                (None, None, NUM_BINS, NUM_BINS),
                lambda bi, ci, ti: (bi, ci, 0, 0))),
        compiler_params=pltpu.CompilerParams(
            dimension_semantics=("parallel", "parallel", "arbitrary"),
            vmem_limit_bytes=32 * 1024 * 1024),
    )(x)

    # Tiny 32x32 finalize in plain JAX (negligible cost).  pa / pb are the
    # row / column sums of pab because I_a / I_b are normalized over bins.
    pab = jnp.sum(pab_raw, axis=1) / n                    # (B, 32, 32)
    pa = jnp.sum(pab, axis=2, keepdims=True)              # (B, 32, 1)
    pb = jnp.sum(pab, axis=1, keepdims=True)              # (B, 1, 32)
    papb = pa * pb + 1e-6
    mi = jnp.sum(pab * jnp.log(pab / papb + 1e-6), axis=(1, 2))
    return -jnp.mean(mi)


# ---- pure-JAX reference (mirrors the PyTorch forward) ------------------------
def mutual_information_ref(y_true, y_pred):
    b = y_true.shape[0]
    yt = jnp.clip(y_true.reshape(b, -1), 0.0, MAXVAL)[..., None]   # (B, N, 1)
    yp = jnp.clip(y_pred.reshape(b, -1), 0.0, MAXVAL)[..., None]   # (B, N, 1)
    n = yt.shape[1]
    vbc = jnp.linspace(MINVAL, MAXVAL, NUM_BINS).reshape(1, 1, NUM_BINS)
    ia = jnp.exp(-PRETERM * jnp.square(yt - vbc))
    ia = ia / jnp.sum(ia, axis=-1, keepdims=True)
    ib = jnp.exp(-PRETERM * jnp.square(yp - vbc))
    ib = ib / jnp.sum(ib, axis=-1, keepdims=True)
    pab = jnp.einsum('bni,bnj->bij', ia, ib,
                     precision=lax.Precision.HIGHEST) / n
    pa = jnp.mean(ia, axis=1, keepdims=True)
    pb = jnp.mean(ib, axis=1, keepdims=True)
    papb = jnp.einsum('bxi,bxj->bij', pa, pb,
                      precision=lax.Precision.HIGHEST) + 1e-6
    mi = jnp.sum(pab * jnp.log(pab / papb + 1e-6), axis=(1, 2))
    return -jnp.mean(mi)


if __name__ == "__main__":
    key = jax.random.PRNGKey(0)
    k1, k2 = jax.random.split(key)
    shape = (2, 4, 16, 16)                              # NCHW, N = 4*16*16 = 1024
    y_true = jax.random.uniform(k1, shape, dtype=jnp.float32)
    y_pred = jax.random.uniform(k2, shape, dtype=jnp.float32)

    loss = jax.block_until_ready(mutual_information(y_true, y_pred))
    ref = jax.block_until_ready(mutual_information_ref(y_true, y_pred))
    np.testing.assert_allclose(np.asarray(loss), np.asarray(ref),
                               rtol=2e-2, atol=5e-3)
    print("KERNEL_OK")
</pallas_src>

<mosaic_0001>
module attributes {stable_mosaic.version = 11 : i64} {
  func.func @_mi_pab_kernel(%arg0: i32, %arg1: i32, %arg2: i32, %arg3: memref<1x2x1024xf32, #tpu.memory_space<vmem>>, %arg4: memref<1x1x32x32xf32, #tpu.memory_space<vmem>>) attributes {dimension_semantics = [#tpu.dimension_semantics<parallel>, #tpu.dimension_semantics<parallel>, #tpu.dimension_semantics<arbitrary>], iteration_bounds = array<i64: 2, 1, 1>, scalar_prefetch = 0 : i64, scratch_operands = 0 : i64, tpu.core_type = #tpu.core_type<tc>, window_params = [{transform_indices = @transform_0, window_bounds = array<i64: 1, 2, 1024>}, {transform_indices = @transform_1, window_bounds = array<i64: 1, 1, 32, 32>}]} {
    %c0_i32 = arith.constant 0 : i32
    %0 = arith.cmpi eq, %arg2, %c0_i32 : i32
    %1 = arith.extui %0 : i1 to i32
    %c0_i32_0 = arith.constant 0 : i32
    %2 = arith.cmpi ne, %1, %c0_i32_0 : i32
    scf.if %2 {
      %cst_21 = arith.constant 0.000000e+00 : f32
      %58 = vector.broadcast %cst_21 : f32 to vector<32x32xf32>
      %c0_22 = arith.constant 0 : index
      %c0_23 = arith.constant 0 : index
      %c0_24 = arith.constant 0 : index
      %c0_25 = arith.constant 0 : index
      %59 = vector.load %arg4[%c0_22, %c0_23, %c0_24, %c0_25] : memref<1x1x32x32xf32, #tpu.memory_space<vmem>>, vector<1x1x32x32xf32>
      %60 = vector.shape_cast %59 : vector<1x1x32x32xf32> to vector<32x32xf32>
      %61 = vector.shape_cast %58 : vector<32x32xf32> to vector<1x1x32x32xf32>
      tpu.vector_store %arg4[%c0_22, %c0_23, %c0_24, %c0_25], %61 {strides = array<i32>} : memref<1x1x32x32xf32, #tpu.memory_space<vmem>>, vector<1x1x32x32xf32>,
    } else {
    }
    %3 = tpu.iota {dimensions = array<i32: 0>} : vector<32x1xi32>
    %4 = arith.sitofp %3 : vector<32x1xi32> to vector<32x1xf32>
    %cst = arith.constant 0.0322580636 : f32
    %5 = vector.broadcast %cst : f32 to vector<32x1xf32>
    %6 = arith.mulf %5, %4 : vector<32x1xf32>
    %cst_1 = arith.constant 0.000000e+00 : f32
    %7 = vector.broadcast %cst_1 : f32 to vector<32x1xf32>
    %8 = arith.addf %7, %6 : vector<32x1xf32>
    %c0 = arith.constant 0 : index
    %c0_2 = arith.constant 0 : index
    %c0_3 = arith.constant 0 : index
    %9 = vector.load %arg3[%c0, %c0_2, %c0_3] : memref<1x2x1024xf32, #tpu.memory_space<vmem>>, vector<1x2x1024xf32>
    %10 = vector.shape_cast %9 : vector<1x2x1024xf32> to vector<2x1024xf32>
    %cst_4 = arith.constant 0.000000e+00 : f32
    %cst_5 = arith.constant 1.000000e+00 : f32
    %11 = vector.broadcast %cst_4 : f32 to vector<2x1024xf32>
    %12 = arith.maximumf %11, %10 : vector<2x1024xf32>
    %13 = vector.broadcast %cst_5 : f32 to vector<2x1024xf32>
    %14 = arith.minimumf %13, %12 : vector<2x1024xf32>
    %15 = vector.extract_strided_slice %14 {offsets = [0, 0], sizes = [1, 1024], strides = [1, 1]} : vector<2x1024xf32> to vector<1x1024xf32>
    %16 = vector.extract_strided_slice %14 {offsets = [1, 0], sizes = [1, 1024], strides = [1, 1]} : vector<2x1024xf32> to vector<1x1024xf32>
    %17 = vector.broadcast %15 : vector<1x1024xf32> to vector<32x1024xf32>
    %18 = vector.broadcast %8 : vector<32x1xf32> to vector<32x1024xf32>
    %19 = arith.subf %17, %18 : vector<32x1024xf32>
    %20 = arith.mulf %19, %19 : vector<32x1024xf32>
    %cst_6 = arith.constant -4.805000e+02 : f32
    %21 = vector.broadcast %cst_6 : f32 to vector<32x1024xf32>
    %22 = arith.mulf %21, %20 : vector<32x1024xf32>
    %23 = math.exp %22 : vector<32x1024xf32>
    %cst_7 = arith.constant dense<0.000000e+00> : vector<1024xf32>
    %24 = vector.multi_reduction <add>, %23, %cst_7 [0] : vector<32x1024xf32> to vector<1024xf32>
    %25 = vector.shape_cast %24 : vector<1024xf32> to vector<1x1024xf32>
    %26 = tpu.reciprocal %25 {approx = true} : vector<1x1024xf32> -> vector<1x1024xf32>
    %27 = arith.mulf %25, %26 : vector<1x1024xf32>
    %cst_8 = arith.constant 2.000000e+00 : f32
    %28 = vector.broadcast %cst_8 : f32 to vector<1x1024xf32>
    %29 = arith.subf %28, %27 : vector<1x1024xf32>
    %30 = arith.mulf %26, %29 : vector<1x1024xf32>
    %31 = vector.broadcast %30 : vector<1x1024xf32> to vector<32x1024xf32>
    %32 = arith.mulf %23, %31 : vector<32x1024xf32>
    %33 = vector.broadcast %16 : vector<1x1024xf32> to vector<32x1024xf32>
    %34 = vector.broadcast %8 : vector<32x1xf32> to vector<32x1024xf32>
    %35 = arith.subf %33, %34 : vector<32x1024xf32>
    %36 = arith.mulf %35, %35 : vector<32x1024xf32>
    %cst_9 = arith.constant -4.805000e+02 : f32
    %37 = vector.broadcast %cst_9 : f32 to vector<32x1024xf32>
    %38 = arith.mulf %37, %36 : vector<32x1024xf32>
    %39 = math.exp %38 : vector<32x1024xf32>
    %cst_10 = arith.constant dense<0.000000e+00> : vector<1024xf32>
    %40 = vector.multi_reduction <add>, %39, %cst_10 [0] : vector<32x1024xf32> to vector<1024xf32>
    %41 = vector.shape_cast %40 : vector<1024xf32> to vector<1x1024xf32>
    %42 = tpu.reciprocal %41 {approx = true} : vector<1x1024xf32> -> vector<1x1024xf32>
    %43 = arith.mulf %41, %42 : vector<1x1024xf32>
    %cst_11 = arith.constant 2.000000e+00 : f32
    %44 = vector.broadcast %cst_11 : f32 to vector<1x1024xf32>
    %45 = arith.subf %44, %43 : vector<1x1024xf32>
    %46 = arith.mulf %42, %45 : vector<1x1024xf32>
    %47 = vector.broadcast %46 : vector<1x1024xf32> to vector<32x1024xf32>
    %48 = arith.mulf %39, %47 : vector<32x1024xf32>
    %c0_12 = arith.constant 0 : index
    %c0_13 = arith.constant 0 : index
    %c0_14 = arith.constant 0 : index
    %c0_15 = arith.constant 0 : index
    %49 = vector.load %arg4[%c0_12, %c0_13, %c0_14, %c0_15] : memref<1x1x32x32xf32, #tpu.memory_space<vmem>>, vector<1x1x32x32xf32>
    %50 = vector.shape_cast %49 : vector<1x1x32x32xf32> to vector<32x32xf32>
    %51 = arith.truncf %32 : vector<32x1024xf32> to vector<32x1024xbf16>
    %52 = arith.truncf %48 : vector<32x1024xf32> to vector<32x1024xbf16>
    %cst_16 = arith.constant dense<0.000000e+00> : vector<32x32xf32>
    %53 = tpu.matmul %51, %52, %cst_16 {dimension_numbers = #tpu.dot_dimension_numbers<[1], [1], [0], [0], [0, 0, 1, 0], [], []>} : vector<32x1024xbf16>, vector<32x1024xbf16>, vector<32x32xf32> -> vector<32x32xf32>
    %54 = arith.addf %50, %53 : vector<32x32xf32>
    %c0_17 = arith.constant 0 : index
    %c0_18 = arith.constant 0 : index
    %c0_19 = arith.constant 0 : index
    %c0_20 = arith.constant 0 : index
    %55 = vector.load %arg4[%c0_17, %c0_18, %c0_19, %c0_20] : memref<1x1x32x32xf32, #tpu.memory_space<vmem>>, vector<1x1x32x32xf32>
    %56 = vector.shape_cast %55 : vector<1x1x32x32xf32> to vector<32x32xf32>
    %57 = vector.shape_cast %54 : vector<32x32xf32> to vector<1x1x32x32xf32>
    tpu.vector_store %arg4[%c0_17, %c0_18, %c0_19, %c0_20], %57 {strides = array<i32>} : memref<1x1x32x32xf32, #tpu.memory_space<vmem>>, vector<1x1x32x32xf32>,
    return
  }
  func.func @transform_0(%arg0: i32, %arg1: i32, %arg2: i32) -> (i32, i32, i32) {
    %c1_i32 = arith.constant 1 : i32
    %0 = arith.muli %arg1, %c1_i32 : i32
    %1 = arith.addi %0, %arg2 : i32
    %c0_i32 = arith.constant 0 : i32
    %c0_i32_0 = arith.constant 0 : i32
    return %arg0, %c0_i32, %1 : i32, i32, i32
  }
  func.func @transform_1(%arg0: i32, %arg1: i32, %arg2: i32) -> (i32, i32, i32, i32) {
    %c0_i32 = arith.constant 0 : i32
    %c0_i32_0 = arith.constant 0 : i32
    %c0_i32_1 = arith.constant 0 : i32
    return %arg0, %arg1, %c0_i32, %c0_i32_0 : i32, i32, i32, i32
  }
}

</mosaic_0001>

<bundles_post_ra>
// kernel: tpu_custom_call.1
= control target key start
LH: loop header
LB: loop body
LE: loop exit
PB: predicated region body
PF: predicated region fallthrough
CT: control target
= control target key end

     0   :  { %6 = vsyncpa [#allocation3], 0  ;;  %s2043_s0 = inlined_call_operand.hbm [shape: f32[2,2,1024], index: 0, kind: input, shape index: {}]   ;;  %s2044_s1 = inlined_call_operand.hbm [shape: f32[2,1,32,32], index: 1, kind: output, shape index: {}]  }
   0x1   :  { %8 = vsyncpa [#allocation3 + $0x1], 0 }
   0x2   :  { %9 = vsyncpa [#allocation4], 0 }
   0x3   :  { %11 = vsyncpa [#allocation4 + $0x1], 0  ;;  %s1515_s6 = smov 0   ;;  %s1517_s7 = smov 0  }
   0x4   :  { %s1519_s8 = smov 0   ;;  %s1521_s9 = smov 0  }
   0x5   :  { %s1523_s10 = smov 0   ;;  %s1525_s11 = smov 0  }
   0x6 LB: > { %s1146_s12 = sadd.s32 4294967295, %s1500_s11   ;;  %s1147_s13 = sadd.s32 4294967294, %s1500_s11   ;;  %s1500_s11 = sphi %s1525_s11, %s17_s11   ;;  %s1496_s10 = sphi %s1523_s10, %s2053_s10   ;;  %s1492_s9 = sphi %s1521_s9, %s2052_s9   ;;  %s1488_s8 = sphi %s1519_s8, %s2051_s8   ;;  %s1484_s7 = sphi %s1517_s7, %s2050_s7   ;;  %s1480_s6 = sphi %s1515_s6, %s2049_s6  }
   0x7   : > { %s36_s14 = sadd.s32 1, %s1496_s10  ;;  %s47_s15 = sadd.s32 1, %s1488_s8 }
   0x8   : > { %p38_p0 = scmp.ge.s32.totalorder %s36_s14, 2  ;;  %p54_p1 = scmp.ne.s32.totalorder %s1488_s8, %s1484_s7 }
   0x9   : > { %p55_p2 = scmp.eq.s32.totalorder %s1500_s11, 0  ;;  %p60_p3 = scmp.ne.s32.totalorder %s1484_s7, %s1480_s6 }
   0xa   : > { %s2055_s14 = smov (%p38_p0, %s36_s14), 0  ;;  %p61_p5 = scmp.eq.s32.totalorder %s1146_s12, 0 }
   0xb   : > { %p1556_p4 = por %p55_p2, %p54_p1  ;;  %s42_s17 = ssub.s32 %s1496_s10, %s2055_s14 }
   0xc   : > { %p86_p6 = scmp.eq.s32.totalorder %s1146_s12, 1  ;;  %p45_p7 = scmp.eq.s32.totalorder %s42_s17, 0 }
   0xd   : > { %p1562_p8 = por %p61_p5, %p60_p3  ;;  %p92_p10 = scmp.eq.s32.totalorder %s1147_s13, 1 }
   0xe   : > { %p1566_p9 = por %p86_p6, %p54_p1  ;;  %p1149_p12 = scmp.ge.s32.totalorder %s1500_s11, 2 }
   0xf   : > { %s1571_s20 = scalar_select %p45_p7, %s1488_s8, %s47_s15  }
  0x10   : > { %p1573_p11 = por %p92_p10, %p60_p3  ;;  %p1175_p13 = scmp.lt.s32.totalorder %s1500_s11, 2 }
  0x11   : > { %s112_s22 = sand.u32 1, %s1488_s8   ;;  %s1161_s24 = sshll.u32 %s1496_s10, 4 }
  0x12   : > { %s1150_s23 = sshll.u32 %s112_s22, 4  ;;  %s124_s27 = scalar_lea.hbm %s2043_s0, %s1161_s24 }
  0x13   : > { %s116_s28 = scalar_lea.vmem [#allocation2], %s1150_s23  ;;  %s126_s30 = sshll.u32 %s124_s27, 4  ;;  %s127_s30 = int_to_ptr.hbm [resolvable:$true] %s126_s30 }
  0x14   : > { %s128_s29 = sshll.u32 %s116_s28, 4  ;;  %p1168_p0 = pnand %p1175_p13, %p1556_p4  ;;  %s129_s29 = int_to_ptr.vmem [resolvable:$true] %s128_s29 }
  0x15   : > { %p1153_p1 = scmp.ge.s32.totalorder %s1500_s11, 1  ;;  %p133_p2 = scmp.lt.s32.totalorder %s1500_s11, 3 }
  0x16   : > { %s113_s2 = scalar_lea.sflag [#allocation3], %s112_s22 }
  0x17   : > { %1170 = dma.hbm_to_vmem [thread:$0]  (!%p1168_p0), %s127_s30, 256, %s129_s29, %s113_s2  }
  0x18   : > { %p134_p3 = pnand %p1153_p1, %p133_p2 }
  0x19   : > { %s1589_s3 = sand.u32 (!%p134_p3), 1, %s1484_s7  }
  0x1a   : > { %137 = sbr.rel (%p134_p3) target bundleno = 394 (0x18a), region = 24  ;;  %s1154_s4 = sshll.u32 (!%p134_p3), %s1589_s3, 4 }
  0x1b   : > { %s140_s5 = scalar_lea.sflag (!%p134_p3), [#allocation3], %s1589_s3  ;;  %s1593_s12 = scalar_lea.vmem (!%p134_p3), [#allocation2], %s1154_s4 }
  0x1f   : > { %1471 = dma.done.wait (%p1562_p8), %s140_s5, 256  }
  0x20   : > { %1473 = vsyncadd (%p1562_p8), %s140_s5, 4294967040  ;;  %v175_v0 = vlaneseq  ;;  %v192_v6 = vld [vmem:[%s1593_s12] sm:$0xff]  ;;  %s1155_s13 = sshll.u32 %s1589_s3, 5  ;;  %vm170_vm0 = vcmask 261120   ;;  %s1162_s16 = sshll.u32 %s1492_s9, 5 }
  0x21   : > { %v194_v10 = vmax.f32 %v192_v6, 0.0  ;;  %s1982_s15 = scalar_lea.vmem [#allocation5], %s1155_s13  ;;  %s1051_s22 = scalar_lea.hbm %s2044_s1, %s1162_s16 }
  0x22   : > { %v176_v1 = vshrl.u32 %v175_v0, 7  ;;  %s1052_s23 = sshll.u32 %s1982_s15, 4  ;;  %s1054_s24 = sshll.u32 %s1051_s22, 4  ;;  %s1053_s23 = int_to_ptr.vmem [resolvable:$true] %s1052_s23  ;;  %s1055_s24 = int_to_ptr.hbm [resolvable:$true] %s1054_s24 }
  0x23   : > { %v1602_v12 = vmin.f32 %v194_v10, 1.0  ;;  %s1038_s9 = scalar_lea.sflag [#allocation4], %s1589_s3  ;;  %s1432_s25 = sshra.s32 %s1055_s24, 4  ;;  %s1433_s25 = int_to_ptr.hbm [resolvable:$true] %s1432_s25 }
  0x24   : > { %v177_v2 = vadd.s32 8, %v176_v1  ;;  %v178_v3 = vadd.s32 16, %v176_v1  ;;  %v179_v4 = vadd.s32 24, %v176_v1  ;;  %v180_v5 = vcvt.s32.f32 %v176_v1  ;;  %s1434_s26 = scalar_lea.hbm %s1433_s25, 32  ;;  %s1438_s29 = scalar_lea.hbm %s2044_s1, 64 }
  0x25   : > { %v520_v16 = vperm.slane %v1602_v12, 1  ;;  %v521_v17 = vperm.slane %v1602_v12, 3  ;;  %v522_v18 = vperm.slane %v1602_v12, 5  ;;  %v523_v19 = vperm.slane %v1602_v12, 7  ;;  %p1435_p4 = scmp.ne.s32.totalorder %s1433_s25, %s1434_s26  ;;  %p1439_p7 = scmp.lt.s32.totalorder %s1433_s25, %s2044_s1 }
  0x26   : > { %v181_v7 = vcvt.s32.f32 %v177_v2  ;;  %v182_v8 = vcvt.s32.f32 %v178_v3  ;;  %v183_v9 = vcvt.s32.f32 %v179_v4  ;;  %v1600_v11 = vmul.f32 0.032258064, %v180_v5  ;;  %p1440_p8 = scmp.lt.s32.totalorder %s1438_s29, %s1434_s26 }
  0x27   : > { %v200_v20 = vperm.slane %v1602_v12, 0  ;;  %v201_v21 = vperm.slane %v1602_v12, 2  ;;  %v202_v22 = vperm.slane %v1602_v12, 4  ;;  %v536_v23 = vperm.slane %v520_v16, 1  ;;  %p1436_p5 = pnand %p1435_p4, %p1566_p9 }
  0x28   : > { %v1604_v13 = vmul.f32 0.032258064, %v181_v7  ;;  %v1606_v14 = vmul.f32 0.032258064, %v182_v8  ;;  %v1608_v15 = vmul.f32 0.032258064, %v183_v9  ;;  %p1441_p10 = por %p1440_p8, %p1439_p7 }
  0x29   : > { %v537_v24 = vperm.slane %v521_v17, 1  ;;  %v538_v25 = vperm.slane %v522_v18, 1  ;;  %v539_v26 = vperm.slane %v523_v19, 1  ;;  %v1617_v27 = vperm.slane %v200_v20, 0  ;;  %p1437_p6 = pneg %p1436_p5 }
  0x2a   : > { %v1619_v28 = vperm.slane %v201_v21, 0  ;;  %v1621_v29 = vperm.slane %v202_v22, 0  ;;  %v544_v30 = vsub.f32 %v536_v23, %v1600_v11  ;;  %v552_v31 = vsub.f32 %v536_v23, %v1604_v13 }
  0x2b   : > { %v560_v32 = vsub.f32 %v536_v23, %v1606_v14  ;;  %v568_v33 = vsub.f32 %v536_v23, %v1608_v15  ;;  %v545_v34 = vsub.f32 %v537_v24, %v1600_v11  ;;  %v553_v35 = vsub.f32 %v537_v24, %v1604_v13  ;;  %p1442_p13 = pnand %p1441_p10, %p1437_p6 }
  0x2c   : > { %v561_v36 = vsub.f32 %v537_v24, %v1606_v14  ;;  %v569_v37 = vsub.f32 %v537_v24, %v1608_v15  ;;  %v576_v38 = vmul.f32 %v544_v30, %v544_v30  ;;  %v584_v39 = vmul.f32 %v552_v31, %v552_v31 }
  0x2d   : > { %v592_v40 = vmul.f32 %v560_v32, %v560_v32  ;;  %v600_v41 = vmul.f32 %v568_v33, %v568_v33  ;;  %v577_v42 = vmul.f32 %v545_v34, %v545_v34  ;;  %v585_v43 = vmul.f32 %v553_v35, %v553_v35 }
  0x2e   : > { %v593_v44 = vmul.f32 %v561_v36, %v561_v36  ;;  %v601_v45 = vmul.f32 %v569_v37, %v569_v37  ;;  %v608_v46 = vmul.f32 -480.5, %v576_v38  ;;  %v616_v47 = vmul.f32 -480.5, %v584_v39 }
  0x2f   : > { %v624_v48 = vmul.f32 -480.5, %v592_v40  ;;  %v632_v49 = vmul.f32 -480.5, %v600_v41  ;;  %v609_v50 = vmul.f32 -480.5, %v577_v42  ;;  %v617_v51 = vmul.f32 -480.5, %v585_v43 }
  0x30   : > { %v625_v52 = vmul.f32 -480.5, %v593_v44  ;;  %v633_v53 = vmul.f32 -480.5, %v601_v45  ;;  %v640_v54 = vmul.f32 1.442695, %v608_v46  ;;  %v656_v55 = vmul.f32 1.442695, %v616_v47 }
  0x31   : > { %v672_v56 = vmul.f32 1.442695, %v624_v48  ;;  %v546_v57 = vsub.f32 %v538_v25, %v1600_v11  ;;  %v688_v58 = vmul.f32 1.442695, %v632_v49  ;;  %v642_v59 = vmul.f32 1.442695, %v609_v50 }
  0x32   : > { %v658_v60 = vmul.f32 1.442695, %v617_v51  ;;  %v554_v61 = vsub.f32 %v538_v25, %v1604_v13  ;;  %1228 = vpow2.f32 %v640_v54  ;;  %v674_v62 = vmul.f32 1.442695, %v625_v52 }
  0x33   : > { %v690_v63 = vmul.f32 1.442695, %v633_v53  ;;  %v562_v0 = vsub.f32 %v538_v25, %v1606_v14  ;;  %1230 = vpow2.f32 %v656_v55  ;;  %v570_v1 = vsub.f32 %v538_v25, %v1608_v15 }
  0x34   : > { %v578_v2 = vmul.f32 %v546_v57, %v546_v57  ;;  %v586_v3 = vmul.f32 %v554_v61, %v554_v61  ;;  %1232 = vpow2.f32 %v672_v56  ;;  %v547_v5 = vsub.f32 %v539_v26, %v1600_v11 }
  0x35   : > { %v594_v4 = vmul.f32 %v562_v0, %v562_v0  ;;  %v555_v6 = vsub.f32 %v539_v26, %v1604_v13  ;;  %1234 = vpow2.f32 %v688_v58  ;;  %v602_v7 = vmul.f32 %v570_v1, %v570_v1 }
  0x36   : > { %v610_v8 = vmul.f32 -480.5, %v578_v2  ;;  %v618_v9 = vmul.f32 -480.5, %v586_v3  ;;  %1236 = vpow2.f32 %v642_v59  ;;  %v563_v16 = vsub.f32 %v539_v26, %v1606_v14 }
  0x37   : > { %v626_v10 = vmul.f32 -480.5, %v594_v4  ;;  %v571_v17 = vsub.f32 %v539_v26, %v1608_v15  ;;  %1238 = vpow2.f32 %v658_v60  ;;  %v634_v18 = vmul.f32 -480.5, %v602_v7 }
  0x38   : > { %v644_v19 = vmul.f32 1.442695, %v610_v8  ;;  %v660_v20 = vmul.f32 1.442695, %v618_v9  ;;  %v1639_v21 = vpop.eup %1228  ;;  %1240 = vpow2.f32 %v674_v62  ;;  %v579_v23 = vmul.f32 %v547_v5, %v547_v5 }
  0x39   : > { %v676_v22 = vmul.f32 1.442695, %v626_v10  ;;  %v587_v24 = vmul.f32 %v555_v6, %v555_v6  ;;  %v1641_v25 = vpop.eup %1230  ;;  %1242 = vpow2.f32 %v690_v63  ;;  %v692_v30 = vmul.f32 1.442695, %v634_v18 }
  0x3a   : > { %v595_v31 = vmul.f32 %v563_v16, %v563_v16  ;;  %v603_v32 = vmul.f32 %v571_v17, %v571_v17  ;;  %v1643_v33 = vpop.eup %1232  ;;  %v704_v26 = vadd.f32 %v1641_v25, %v1639_v21  ;;  %1244 = vpow2.f32 %v644_v19 }
  0x3b   : > { %v611_v34 = vmul.f32 -480.5, %v579_v23  ;;  %v619_v35 = vmul.f32 -480.5, %v587_v24  ;;  %v1647_v36 = vpop.eup %1234  ;;  %1246 = vpow2.f32 %v660_v20  ;;  %v224_v39 = vsub.f32 %v1617_v27, %v1600_v11 }
  0x3c   : > { %v627_v37 = vmul.f32 -480.5, %v595_v31  ;;  %v635_v38 = vmul.f32 -480.5, %v603_v32  ;;  %v1651_v40 = vpop.eup %1236  ;;  %v705_v41 = vadd.f32 %v1643_v33, %v704_v26  ;;  %1248 = vpow2.f32 %v676_v22 }
  0x3d   : > { %v646_v42 = vmul.f32 1.442695, %v611_v34  ;;  %v662_v43 = vmul.f32 1.442695, %v619_v35  ;;  %v1654_v44 = vpop.eup %1238  ;;  %1250 = vpow2.f32 %v692_v30  ;;  %v232_v47 = vsub.f32 %v1617_v27, %v1604_v13 }
  0x3e   : > { %v678_v45 = vmul.f32 1.442695, %v627_v37  ;;  %v694_v46 = vmul.f32 1.442695, %v635_v38  ;;  %v1658_v48 = vpop.eup %1240  ;;  %v706_v49 = vadd.f32 %v1647_v36, %v705_v41  ;;  %v713_v50 = vadd.f32 %v1654_v44, %v1651_v40 }
  0x3f   : > { %1252 = vpow2.f32 %v646_v42  ;;  %v240_v51 = vsub.f32 %v1617_v27, %v1606_v14  ;;  %v1665_v52 = vpop.eup %1242  ;;  %v248_v53 = vsub.f32 %v1617_v27, %v1608_v15  ;;  %v256_v54 = vmul.f32 %v224_v39, %v224_v39 }
  0x40   : > { %1254 = vpow2.f32 %v662_v43  ;;  %v264_v55 = vmul.f32 %v232_v47, %v232_v47  ;;  %v1669_v56 = vpop.eup %1244  ;;  %v707_v57 = vrot.slane %v706_v49, 4  ;;  %v714_v58 = vadd.f32 %v1658_v48, %v713_v50 }
  0x41   : > { %1256 = vpow2.f32 %v678_v45  ;;  %v272_v59 = vmul.f32 %v240_v51, %v240_v51  ;;  %v1672_v60 = vpop.eup %1246  ;;  %v280_v61 = vmul.f32 %v248_v53, %v248_v53  ;;  %v288_v62 = vmul.f32 -480.5, %v256_v54 }
  0x42   : > { %1258 = vpow2.f32 %v694_v46  ;;  %v296_v63 = vmul.f32 -480.5, %v264_v55  ;;  %v1674_v0 = vpop.eup %1248  ;;  %v708_v1 = vadd.f32 %v707_v57, %v706_v49  ;;  %v715_v27 = vadd.f32 %v1665_v52, %v714_v58 }
  0x43   : > { %v722_v2 = vadd.f32 %v1672_v60, %v1669_v56  ;;  %v304_v3 = vmul.f32 -480.5, %v272_v59  ;;  %v1679_v4 = vpop.eup %1250  ;;  %v312_v5 = vmul.f32 -480.5, %v280_v61  ;;  %v320_v6 = vmul.f32 1.442695, %v288_v62 }
  0x44   : > { %v336_v7 = vmul.f32 1.442695, %v296_v63  ;;  %v225_v8 = vsub.f32 %v1619_v28, %v1600_v11  ;;  %v709_v10 = vrot.slane %v708_v1, 2  ;;  %v716_v16 = vrot.slane %v715_v27, 4 }
  0x45   : > { %v1683_v9 = vpop.eup %1252  ;;  %v723_v17 = vadd.f32 %v1674_v0, %v722_v2  ;;  %v352_v18 = vmul.f32 1.442695, %v304_v3  ;;  %1260 = vpow2.f32 %v320_v6  ;;  %v368_v20 = vmul.f32 1.442695, %v312_v5 }
  0x46   : > { %v1686_v19 = vpop.eup %1254  ;;  %v233_v22 = vsub.f32 %v1619_v28, %v1604_v13  ;;  %v241_v23 = vsub.f32 %v1619_v28, %v1606_v14  ;;  %v710_v30 = vadd.f32 %v709_v10, %v708_v1  ;;  %v717_v31 = vadd.f32 %v716_v16, %v715_v27 }
  0x47   : > { %v1692_v24 = vpop.eup %1256  ;;  %v724_v32 = vadd.f32 %v1679_v4, %v723_v17  ;;  %v731_v26 = vadd.f32 %v1686_v19, %v1683_v9  ;;  %1262 = vpow2.f32 %v336_v7  ;;  %v249_v35 = vsub.f32 %v1619_v28, %v1608_v15 }
  0x48   : > { %v1697_v34 = vpop.eup %1258  ;;  %v257_v37 = vmul.f32 %v225_v8, %v225_v8  ;;  %v265_v38 = vmul.f32 %v233_v22, %v233_v22  ;;  %v711_v39 = vrot.slane %v710_v30, 1  ;;  %v718_v41 = vrot.slane %v717_v31, 2 }
  0x49   : > { %v725_v42 = vrot.slane %v724_v32, 4  ;;  %v732_v43 = vadd.f32 %v1692_v24, %v731_v26  ;;  %1264 = vpow2.f32 %v352_v18  ;;  %v273_v45 = vmul.f32 %v241_v23, %v241_v23 }
  0x4a   : > { %v281_v46 = vmul.f32 %v249_v35, %v249_v35  ;;  %v289_v47 = vmul.f32 -480.5, %v257_v37  ;;  %v712_v49 = vadd.f32 %v711_v39, %v710_v30  ;;  %v719_v50 = vadd.f32 %v718_v41, %v717_v31 }
  0x4b   : > { %v726_v51 = vadd.f32 %v725_v42, %v724_v32  ;;  %v733_v53 = vadd.f32 %v1697_v34, %v732_v43  ;;  %v1703_v54 = vpop.eup %1260  ;;  %1266 = vpow2.f32 %v368_v20  ;;  %v297_v28 = vmul.f32 -480.5, %v265_v38 }
  0x4c   : > { %v305_v55 = vmul.f32 -480.5, %v273_v45  ;;  %v313_v57 = vmul.f32 -480.5, %v281_v46  ;;  %1268 = vrcp.f32 %v712_v49  ;;  %v720_v58 = vrot.slane %v719_v50, 1 }
  0x4d   : > { %v727_v59 = vrot.slane %v726_v51, 2  ;;  %v734_v61 = vrot.slane %v733_v53, 4  ;;  %v1705_v62 = vpop.eup %1262  ;;  %v322_v63 = vmul.f32 1.442695, %v289_v47  ;;  %v338_v1 = vmul.f32 1.442695, %v297_v28 }
  0x4e   : > { %v354_v27 = vmul.f32 1.442695, %v305_v55  ;;  %v226_v2 = vsub.f32 %v1621_v29, %v1600_v11  ;;  %v721_v3 = vadd.f32 %v720_v58, %v719_v50  ;;  %v384_v7 = vadd.f32 %v1705_v62, %v1703_v54 }
  0x4f   : > { %v728_v5 = vadd.f32 %v727_v59, %v726_v51  ;;  %v735_v6 = vadd.f32 %v734_v61, %v733_v53  ;;  %v1711_v8 = vpop.eup %1264  ;;  %1270 = vpow2.f32 %v322_v63  ;;  %v370_v10 = vmul.f32 1.442695, %v313_v57 }
  0x50   : > { %v234_v16 = vsub.f32 %v1621_v29, %v1604_v13  ;;  %v242_v17 = vsub.f32 %v1621_v29, %v1606_v14  ;;  %1272 = vrcp.f32 %v721_v3  ;;  %v385_v22 = vadd.f32 %v1711_v8, %v384_v7 }
  0x51   : > { %v729_v18 = vrot.slane %v728_v5, 1  ;;  %v736_v20 = vrot.slane %v735_v6, 2  ;;  %v1718_v23 = vpop.eup %1266  ;;  %1274 = vpow2.f32 %v338_v1  ;;  %v250_v30 = vsub.f32 %v1621_v29, %v1608_v15 }
  0x52   : > { %v258_v31 = vmul.f32 %v226_v2, %v226_v2  ;;  %v266_v32 = vmul.f32 %v234_v16, %v234_v16  ;;  %v1269_v26 = vpop.eup %1268  ;;  %v386_v38 = vadd.f32 %v1718_v23, %v385_v22  ;;  %1276 = vpow2.f32 %v354_v27 }
  0x53   : > { %v730_v35 = vadd.f32 %v729_v18, %v728_v5  ;;  %v737_v37 = vadd.f32 %v736_v20, %v735_v6  ;;  %v784_v39 = vmul.f32 %v1269_v26, %v712_v49  ;;  %1278 = vpow2.f32 %v370_v10 }
  0x54   : > { %v274_v41 = vmul.f32 %v242_v17, %v242_v17  ;;  %v282_v42 = vmul.f32 %v250_v30, %v250_v30  ;;  %v387_v45 = vrot.slane %v386_v38, 4  ;;  %v290_v46 = vmul.f32 -480.5, %v258_v31 }
  0x55   : > { %1280 = vrcp.f32 %v730_v35  ;;  %v738_v43 = vrot.slane %v737_v37, 1  ;;  %v1723_v47 = vpop.eup %1270  ;;  %v792_v50 = vsub.f32 2.0, %v784_v39  ;;  %v298_v29 = vmul.f32 -480.5, %v266_v32 }
  0x56   : > { %v306_v51 = vmul.f32 -480.5, %v274_v41  ;;  %v314_v53 = vmul.f32 -480.5, %v282_v42  ;;  %v1273_v28 = vpop.eup %1272  ;;  %v388_v57 = vadd.f32 %v387_v45, %v386_v38  ;;  %v324_v58 = vmul.f32 1.442695, %v290_v46  ;;  %v193_v41 = vld [vmem:[%s1593_s12 + $0x8] sm:$0xff] }
  0x57   : > { %v739_v55 = vadd.f32 %v738_v43, %v737_v37  ;;  %v203_v59 = vperm.slane %v1602_v12, 6  ;;  %v1726_v49 = vpop.eup %1274  ;;  %v800_v61 = vmul.f32 %v1269_v26, %v792_v50  ;;  %v785_v63 = vmul.f32 %v1273_v28, %v721_v3 }
  0x58   : > { %v340_v1 = vmul.f32 1.442695, %v298_v29  ;;  %v356_v27 = vmul.f32 1.442695, %v306_v51  ;;  %v1728_v2 = vpop.eup %1276  ;;  %v389_v5 = vrot.slane %v388_v57, 2  ;;  %v393_v6 = vadd.f32 %v1726_v49, %v1723_v47 }
  0x59   : > { %1282 = vrcp.f32 %v739_v55  ;;  %v372_v7 = vmul.f32 1.442695, %v314_v53  ;;  %v1732_v10 = vpop.eup %1278  ;;  %v824_v16 = vmul.f32 %v1643_v33, %v800_v61  ;;  %v832_v12 = vmul.f32 %v1647_v36, %v800_v61 }
  0x5a   : > { %v793_v17 = vsub.f32 2.0, %v785_v63  ;;  %v808_v18 = vmul.f32 %v1639_v21, %v800_v61  ;;  %v816_v20 = vmul.f32 %v1641_v25, %v800_v61  ;;  %v390_v22 = vadd.f32 %v389_v5, %v388_v57 }
  0x5b   : > { %v1281_v3 = vpop.eup %1280  ;;  %v394_v30 = vadd.f32 %v1728_v2, %v393_v6  ;;  %1284 = vpow2.f32 %v324_v58  ;;  %v868_v31 = vpack.c.bf16 %v832_v12, %v824_v16  ;;  %v219_v51 = vperm.slane %v203_v59, 0 }
  0x5c   : > { %v801_v32 = vmul.f32 %v1273_v28, %v793_v17  ;;  %v786_v26 = vmul.f32 %v1281_v3, %v730_v35  ;;  %1286 = vpow2.f32 %v340_v1  ;;  %v860_v37 = vpack.c.bf16 %v816_v20, %v808_v18 }
  0x5d   : > { %v391_v38 = vrot.slane %v390_v22, 1  ;;  %v395_v33 = vadd.f32 %v1732_v10, %v394_v30  ;;  %1288 = vpow2.f32 %v356_v27  ;;  %882 = vmatpush.bf16.xpose.msra.mxu0 %v868_v31  ;;  %v227_v27 = vsub.f32 %v219_v51, %v1600_v11 }
  0x5e   : > { %v825_v21 = vmul.f32 %v1658_v48, %v801_v32  ;;  %v833_v36 = vmul.f32 %v1665_v52, %v801_v32  ;;  %v794_v25 = vsub.f32 2.0, %v786_v26  ;;  %v809_v39 = vmul.f32 %v1651_v40, %v801_v32 }
  0x5f   : > { %v1283_v42 = vpop.eup %1282  ;;  %v817_v43 = vmul.f32 %v1654_v44, %v801_v32  ;;  %v392_v45 = vadd.f32 %v391_v38, %v390_v22  ;;  %v396_v35 = vrot.slane %v395_v33, 4  ;;  %1290 = vpow2.f32 %v372_v7 }
  0x60   : > { %v869_v46 = vpack.c.bf16 %v833_v36, %v825_v21  ;;  %v802_v50 = vmul.f32 %v1281_v3, %v794_v25  ;;  %v787_v29 = vmul.f32 %v1283_v42, %v739_v55  ;;  %v195_v52 = vmax.f32 %v193_v41, 0.0 }
  0x61   : > { %v1745_v53 = vpop.eup %1284  ;;  %v861_v28 = vpack.c.bf16 %v817_v43, %v809_v39  ;;  %1292 = vrcp.f32 %v392_v45  ;;  %v397_v48 = vadd.f32 %v396_v35, %v395_v33  ;;  %v235_v7 = vsub.f32 %v219_v51, %v1604_v13 }
  0x62   : > { %v1747_v57 = vpop.eup %1286  ;;  %901 = vmatpush.bf16.xpose.msra.mxu1 %v869_v46  ;;  %v826_v40 = vmul.f32 %v1674_v0, %v802_v50  ;;  %v834_v44 = vmul.f32 %v1679_v4, %v802_v50  ;;  %v795_v58 = vsub.f32 2.0, %v787_v29  ;;  %v810_v61 = vmul.f32 %v1669_v56, %v802_v50 }
  0x63   : > { %v1752_v63 = vpop.eup %1288  ;;  %v818_v55 = vmul.f32 %v1672_v60, %v802_v50  ;;  %v398_v59 = vrot.slane %v397_v48, 2  ;;  %v402_v1 = vadd.f32 %v1747_v57, %v1745_v53  ;;  %v243_v0 = vsub.f32 %v219_v51, %v1606_v14 }
  0x64   : > { %v870_v5 = vpack.c.bf16 %v834_v44, %v826_v40  ;;  %v803_v6 = vmul.f32 %v1283_v42, %v795_v58  ;;  %v251_v60 = vsub.f32 %v219_v51, %v1608_v15  ;;  %v1767_v20 = vmin.f32 %v195_v52, 1.0 }
  0x65   : > { %v1760_v4 = vpop.eup %1290  ;;  %v862_v16 = vpack.c.bf16 %v818_v55, %v810_v61  ;;  %v399_v56 = vadd.f32 %v398_v59, %v397_v48  ;;  %v403_v12 = vadd.f32 %v1752_v63, %v402_v1  ;;  %883 = vmatpush.bf16.xpose.msra.mxu0 %v860_v37  ;;  %v259_v26 = vmul.f32 %v227_v27, %v227_v27 }
  0x66   : > { %920 = vmatpush.bf16.xpose.msra.mxu2 %v870_v5  ;;  %v827_v17 = vmul.f32 %v1692_v24, %v803_v6  ;;  %v835_v18 = vmul.f32 %v1697_v34, %v803_v6  ;;  %v811_v3 = vmul.f32 %v1683_v9, %v803_v6  ;;  %v819_v30 = vmul.f32 %v1686_v19, %v803_v6 }
  0x67   : > { %v1293_v22 = vpop.eup %1292  ;;  %v400_v31 = vrot.slane %v399_v56, 1  ;;  %v404_v32 = vadd.f32 %v1760_v4, %v403_v12  ;;  %v267_v21 = vmul.f32 %v235_v7, %v235_v7  ;;  %v275_v36 = vmul.f32 %v243_v0, %v243_v0 }
  0x68   : > { %v871_v38 = vpack.c.bf16 %v835_v18, %v827_v17  ;;  %v464_v33 = vmul.f32 %v1293_v22, %v392_v45  ;;  %v863_v25 = vpack.c.bf16 %v819_v30, %v811_v3  ;;  %v283_v34 = vmul.f32 %v251_v60, %v251_v60 }
  0x69   : > { %v401_v24 = vadd.f32 %v400_v31, %v399_v56  ;;  %v405_v39 = vrot.slane %v404_v32, 4  ;;  %v291_v37 = vmul.f32 -480.5, %v259_v26  ;;  %v299_v41 = vmul.f32 -480.5, %v267_v21 }
  0x6a   : > { %939 = vmatpush.bf16.xpose.msra.mxu3 %v871_v38  ;;  %902 = vmatpush.bf16.xpose.msra.mxu1 %v861_v28  ;;  %v472_v9 = vsub.f32 2.0, %v464_v33  ;;  %v307_v42 = vmul.f32 -480.5, %v275_v36  ;;  %v315_v43 = vmul.f32 -480.5, %v283_v34  ;;  %v526_v35 = vperm.slane %v1767_v20, 5 }
  0x6b   : > { %1294 = vrcp.f32 %v401_v24  ;;  %v406_v19 = vadd.f32 %v405_v39, %v404_v32  ;;  %v326_v45 = vmul.f32 1.442695, %v291_v37  ;;  %v342_v50 = vmul.f32 1.442695, %v299_v41 }
  0x6c   : > { %v1772_v46 = vmul.f32 %v1293_v22, %v472_v9  ;;  %v358_v29 = vmul.f32 1.442695, %v307_v42  ;;  %v374_v48 = vmul.f32 1.442695, %v315_v43  ;;  %v542_v52 = vperm.slane %v526_v35, 1 }
  0x6d   : > { %v407_v51 = vrot.slane %v406_v19, 2  ;;  %v524_v40 = vperm.slane %v1767_v20, 1  ;;  %1296 = vpow2.f32 %v326_v45  ;;  %v527_v58 = vperm.slane %v1767_v20, 7 }
  0x6e   : > { %921 = vmatpush.bf16.xpose.msra.mxu2 %v862_v16  ;;  %v488_v28 = vmul.f32 %v1703_v54, %v1772_v46  ;;  %v496_v44 = vmul.f32 %v1705_v62, %v1772_v46  ;;  %1298 = vpow2.f32 %v342_v50  ;;  %v550_v55 = vsub.f32 %v542_v52, %v1600_v11 }
  0x6f   : > { %v408_v61 = vadd.f32 %v407_v51, %v406_v19  ;;  %v558_v59 = vsub.f32 %v542_v52, %v1604_v13  ;;  %1300 = vpow2.f32 %v358_v29  ;;  %v566_v27 = vsub.f32 %v542_v52, %v1606_v14 }
  0x70   : > { %v844_v1 = vpack.c.bf16 %v496_v44, %v488_v28  ;;  %v574_v5 = vsub.f32 %v542_v52, %v1608_v15  ;;  %1302 = vpow2.f32 %v374_v48  ;;  %v582_v7 = vmul.f32 %v550_v55, %v550_v55 }
  0x71   : > { %v1295_v6 = vpop.eup %1294  ;;  %v409_v54 = vrot.slane %v408_v61, 1  ;;  %v590_v62 = vmul.f32 %v558_v59, %v558_v59  ;;  %v598_v16 = vmul.f32 %v566_v27, %v566_v27  ;;  %v540_v12 = vperm.slane %v524_v40, 1 }
  0x72   : > { %940 = vmatpush.bf16.xpose.msra.mxu3 %v863_v25  ;;  %884 = vmatmul.bf16.vlgmr.msra.gmra.mxu0 %v844_v1  ;;  %v465_v0 = vmul.f32 %v1295_v6, %v401_v24  ;;  %v606_v56 = vmul.f32 %v574_v5, %v574_v5  ;;  %v614_v17 = vmul.f32 -480.5, %v582_v7  ;;  %v543_v3 = vperm.slane %v527_v58, 1 }
  0x73   : > { %v410_v60 = vadd.f32 %v409_v54, %v408_v61  ;;  %v622_v18 = vmul.f32 -480.5, %v590_v62  ;;  %v1784_v22 = vpop.eup %1296  ;;  %v630_v31 = vmul.f32 -480.5, %v598_v16  ;;  %v548_v26 = vsub.f32 %v540_v12, %v1600_v11 }
  0x74   : > { %v473_v30 = vsub.f32 2.0, %v465_v0  ;;  %v638_v32 = vmul.f32 -480.5, %v606_v56  ;;  %v1787_v38 = vpop.eup %1298  ;;  %v652_v33 = vmul.f32 1.442695, %v614_v17  ;;  %v556_v36 = vsub.f32 %v540_v12, %v1604_v13 }
  0x75   : > { %1304 = vrcp.f32 %v410_v60  ;;  %v668_v21 = vmul.f32 1.442695, %v622_v18  ;;  %v1790_v25 = vpop.eup %1300  ;;  %v411_v39 = vadd.f32 %v1787_v38, %v1784_v22  ;;  %v684_v34 = vmul.f32 1.442695, %v630_v31 }
  0x76   : > { %v1792_v24 = vmul.f32 %v1295_v6, %v473_v30  ;;  %v700_v9 = vmul.f32 1.442695, %v638_v32  ;;  %v1796_v37 = vpop.eup %1302  ;;  %1306 = vpow2.f32 %v652_v33  ;;  %v564_v41 = vsub.f32 %v540_v12, %v1606_v14 }
  0x77   : > { %v572_v42 = vsub.f32 %v540_v12, %v1608_v15  ;;  %v580_v19 = vmul.f32 %v548_v26, %v548_v26  ;;  %v412_v45 = vadd.f32 %v1790_v25, %v411_v39  ;;  %1308 = vpow2.f32 %v668_v21 }
  0x78   : > { %v489_v43 = vmul.f32 %v1723_v47, %v1792_v24  ;;  %v497_v35 = vmul.f32 %v1726_v49, %v1792_v24  ;;  %1310 = vpow2.f32 %v684_v34  ;;  %v588_v50 = vmul.f32 %v556_v36, %v556_v36 }
  0x79   : > { %v596_v29 = vmul.f32 %v564_v41, %v564_v41  ;;  %v604_v51 = vmul.f32 %v572_v42, %v572_v42  ;;  %v413_v52 = vadd.f32 %v1796_v37, %v412_v45  ;;  %1312 = vpow2.f32 %v700_v9 }
  0x7a   : > { %v845_v48 = vpack.c.bf16 %v497_v35, %v489_v43  ;;  %v612_v40 = vmul.f32 -480.5, %v580_v19  ;;  %v620_v44 = vmul.f32 -480.5, %v588_v50  ;;  %v551_v47 = vsub.f32 %v543_v3, %v1600_v11 }
  0x7b   : > { %v1305_v28 = vpop.eup %1304  ;;  %v628_v58 = vmul.f32 -480.5, %v596_v29  ;;  %v636_v61 = vmul.f32 -480.5, %v604_v51  ;;  %v414_v55 = vrot.slane %v413_v52, 4  ;;  %v559_v1 = vsub.f32 %v543_v3, %v1604_v13 }
  0x7c   : > { %903 = vmatmul.bf16.vlgmr.msra.gmra.mxu1 %v845_v48  ;;  %v466_v49 = vmul.f32 %v1305_v28, %v410_v60  ;;  %v648_v59 = vmul.f32 1.442695, %v612_v40  ;;  %v1808_v27 = vpop.eup %1306  ;;  %v664_v5 = vmul.f32 1.442695, %v620_v44  ;;  %v567_v7 = vsub.f32 %v543_v3, %v1606_v14 }
  0x7d   : > { %v680_v6 = vmul.f32 1.442695, %v628_v58  ;;  %v696_v54 = vmul.f32 1.442695, %v636_v61  ;;  %v1811_v62 = vpop.eup %1308  ;;  %v415_v16 = vadd.f32 %v414_v55, %v413_v52  ;;  %v575_v56 = vsub.f32 %v543_v3, %v1608_v15 }
  0x7e   : > { %v474_v0 = vsub.f32 2.0, %v466_v49  ;;  %1314 = vpow2.f32 %v648_v59  ;;  %v1814_v12 = vpop.eup %1310  ;;  %v758_v60 = vadd.f32 %v1811_v62, %v1808_v27  ;;  %v583_v17 = vmul.f32 %v551_v47, %v551_v47 }
  0x7f   : > { %1316 = vpow2.f32 %v664_v5  ;;  %v591_v18 = vmul.f32 %v559_v1, %v559_v1  ;;  %v1818_v30 = vpop.eup %1312  ;;  %v416_v32 = vrot.slane %v415_v16, 2  ;;  %v599_v26 = vmul.f32 %v567_v7, %v567_v7 }
  0x80   : > { %v1820_v31 = vmul.f32 %v1305_v28, %v474_v0  ;;  %1318 = vpow2.f32 %v680_v6  ;;  %v759_v33 = vadd.f32 %v1814_v12, %v758_v60  ;;  %v607_v21 = vmul.f32 %v575_v56, %v575_v56 }
  0x81   : > { %1320 = vpow2.f32 %v696_v54  ;;  %v615_v3 = vmul.f32 -480.5, %v583_v17  ;;  %v417_v34 = vadd.f32 %v416_v32, %v415_v16  ;;  %v623_v9 = vmul.f32 -480.5, %v591_v18 }
  0x82   : > { %v490_v36 = vmul.f32 %v1745_v53, %v1820_v31  ;;  %v498_v39 = vmul.f32 %v1747_v57, %v1820_v31  ;;  %v760_v41 = vadd.f32 %v1818_v30, %v759_v33  ;;  %v631_v42 = vmul.f32 -480.5, %v599_v26 }
  0x83   : > { %v639_v19 = vmul.f32 -480.5, %v607_v21  ;;  %v654_v43 = vmul.f32 1.442695, %v615_v3  ;;  %v418_v50 = vrot.slane %v417_v34, 1  ;;  %v670_v29 = vmul.f32 1.442695, %v623_v9 }
  0x84   : > { %v1828_v35 = vpop.eup %1314  ;;  %v846_v45 = vpack.c.bf16 %v498_v39, %v490_v36  ;;  %v525_v51 = vperm.slane %v1767_v20, 3  ;;  %v761_v53 = vrot.slane %v760_v41, 4  ;;  %v686_v52 = vmul.f32 1.442695, %v631_v42 }
  0x85   : > { %v1831_v48 = vpop.eup %1316  ;;  %1322 = vpow2.f32 %v654_v43  ;;  %v702_v57 = vmul.f32 1.442695, %v639_v19  ;;  %v419_v28 = vadd.f32 %v418_v50, %v417_v34  ;;  %v204_v49 = vperm.slane %v1767_v20, 0 }
  0x86   : > { %v1833_v40 = vpop.eup %1318  ;;  %922 = vmatmul.bf16.vlgmr.msra.gmra.mxu2 %v846_v45  ;;  %v740_v44 = vadd.f32 %v1831_v48, %v1828_v35  ;;  %1324 = vpow2.f32 %v670_v29  ;;  %v541_v58 = vperm.slane %v525_v51, 1  ;;  %v762_v47 = vadd.f32 %v761_v53, %v760_v41 }
  0x87   : > { %v1837_v61 = vpop.eup %1320  ;;  %1326 = vpow2.f32 %v686_v52  ;;  %v205_v55 = vperm.slane %v1767_v20, 2  ;;  %v220_v60 = vperm.slane %v204_v49, 0 }
  0x88   : > { %1328 = vrcp.f32 %v419_v28  ;;  %v741_v59 = vadd.f32 %v1833_v40, %v740_v44  ;;  %v549_v1 = vsub.f32 %v541_v58, %v1600_v11  ;;  %v557_v5 = vsub.f32 %v541_v58, %v1604_v13 }
  0x89   : > { %v763_v6 = vrot.slane %v762_v47, 2  ;;  %1330 = vpow2.f32 %v702_v57  ;;  %v565_v54 = vsub.f32 %v541_v58, %v1606_v14  ;;  %v573_v7 = vsub.f32 %v541_v58, %v1608_v15 }
  0x8a   : > { %v742_v0 = vadd.f32 %v1837_v61, %v741_v59  ;;  %v581_v16 = vmul.f32 %v549_v1, %v549_v1  ;;  %v589_v56 = vmul.f32 %v557_v5, %v557_v5  ;;  %v1849_v33 = vperm.slane %v205_v55, 0 }
  0x8b   : > { %v1847_v17 = vpop.eup %1322  ;;  %v764_v18 = vadd.f32 %v763_v6, %v762_v47  ;;  %v597_v32 = vmul.f32 %v565_v54, %v565_v54  ;;  %v605_v26 = vmul.f32 %v573_v7, %v573_v7  ;;  %v228_v34 = vsub.f32 %v220_v60, %v1600_v11 }
  0x8c   : > { %v1851_v21 = vpop.eup %1324  ;;  %v743_v3 = vrot.slane %v742_v0, 4  ;;  %v613_v36 = vmul.f32 -480.5, %v581_v16  ;;  %v621_v39 = vmul.f32 -480.5, %v589_v56  ;;  %v236_v53 = vsub.f32 %v220_v60, %v1604_v13 }
  0x8d   : > { %v1854_v9 = vpop.eup %1326  ;;  %v765_v41 = vrot.slane %v764_v18, 1  ;;  %v767_v42 = vadd.f32 %v1851_v21, %v1847_v17  ;;  %v629_v19 = vmul.f32 -480.5, %v597_v32  ;;  %v637_v43 = vmul.f32 -480.5, %v605_v26 }
  0x8e   : > { %v1329_v45 = vpop.eup %1328  ;;  %v744_v50 = vadd.f32 %v743_v3, %v742_v0  ;;  %v650_v29 = vmul.f32 1.442695, %v613_v36  ;;  %v666_v51 = vmul.f32 1.442695, %v621_v39  ;;  %v244_v59 = vsub.f32 %v220_v60, %v1606_v14 }
  0x8f   : > { %v1859_v52 = vpop.eup %1330  ;;  %v467_v57 = vmul.f32 %v1329_v45, %v419_v28  ;;  %v766_v44 = vadd.f32 %v765_v41, %v764_v18  ;;  %v768_v58 = vadd.f32 %v1854_v9, %v767_v42  ;;  %v682_v47 = vmul.f32 1.442695, %v629_v19 }
  0x90   : > { %v745_v49 = vrot.slane %v744_v50, 2  ;;  %1332 = vpow2.f32 %v650_v29  ;;  %v698_v55 = vmul.f32 1.442695, %v637_v43  ;;  %v252_v6 = vsub.f32 %v220_v60, %v1608_v15 }
  0x91   : > { %v475_v1 = vsub.f32 2.0, %v467_v57  ;;  %1334 = vrcp.f32 %v766_v44  ;;  %v769_v5 = vadd.f32 %v1859_v52, %v768_v58  ;;  %v260_v7 = vmul.f32 %v228_v34, %v228_v34 }
  0x92   : > { %v746_v54 = vadd.f32 %v745_v49, %v744_v50  ;;  %1336 = vpow2.f32 %v666_v51  ;;  %v268_v0 = vmul.f32 %v236_v53, %v236_v53  ;;  %v276_v56 = vmul.f32 %v244_v59, %v244_v59 }
  0x93   : > { %v483_v28 = vmul.f32 %v1329_v45, %v475_v1  ;;  %v770_v16 = vrot.slane %v769_v5, 4  ;;  %1338 = vpow2.f32 %v682_v47  ;;  %v284_v32 = vmul.f32 %v252_v6, %v252_v6 }
  0x94   : > { %v747_v18 = vrot.slane %v746_v54, 1  ;;  %1340 = vpow2.f32 %v698_v55  ;;  %v292_v26 = vmul.f32 -480.5, %v260_v7  ;;  %v300_v41 = vmul.f32 -480.5, %v268_v0 }
  0x95   : > { %v491_v3 = vmul.f32 %v1784_v22, %v483_v28  ;;  %v499_v36 = vmul.f32 %v1787_v38, %v483_v28  ;;  %v771_v39 = vadd.f32 %v770_v16, %v769_v5  ;;  %v308_v19 = vmul.f32 -480.5, %v276_v56 }
  0x96   : > { %v1867_v42 = vpop.eup %1332  ;;  %v748_v60 = vadd.f32 %v747_v18, %v746_v54  ;;  %v316_v34 = vmul.f32 -480.5, %v284_v32  ;;  %v328_v43 = vmul.f32 1.442695, %v292_v26  ;;  %v504_v51 = vmul.f32 %v1711_v8, %v1772_v46 }
  0x97   : > { %v1335_v45 = vpop.eup %1334  ;;  %v847_v50 = vpack.c.bf16 %v499_v36, %v491_v3  ;;  %v772_v29 = vrot.slane %v771_v39, 2  ;;  %v512_v53 = vmul.f32 %v1718_v23, %v1772_v46  ;;  %v505_v57 = vmul.f32 %v1728_v2, %v1792_v24 }
  0x98   : > { %v1873_v22 = vpop.eup %1336  ;;  %v790_v38 = vmul.f32 %v1335_v45, %v766_v44  ;;  %1342 = vrcp.f32 %v748_v60  ;;  %v513_v58 = vmul.f32 %v1732_v10, %v1792_v24  ;;  %v506_v23 = vmul.f32 %v1752_v63, %v1820_v31 }
  0x99   : > { %v1879_v47 = vpop.eup %1338  ;;  %941 = vmatmul.bf16.vlgmr.msra.gmra.mxu3 %v847_v50  ;;  %v773_v49 = vadd.f32 %v772_v29, %v771_v39  ;;  %v749_v8 = vadd.f32 %v1873_v22, %v1867_v42  ;;  %v852_v55 = vpack.c.bf16 %v512_v53, %v504_v51  ;;  %v514_v2 = vmul.f32 %v1760_v4, %v1820_v31 }
  0x9a   : > { %v1885_v46 = vpop.eup %1340  ;;  %v798_v44 = vsub.f32 2.0, %v790_v38  ;;  %v853_v59 = vpack.c.bf16 %v513_v58, %v505_v57  ;;  %v1890_v10 = vmul.f32 %v1790_v25, %v483_v28  ;;  %v1894_v5 = vmul.f32 %v1796_v37, %v483_v28 }
  0x9b   : > { %v774_v24 = vrot.slane %v773_v49, 1  ;;  %v750_v1 = vadd.f32 %v1879_v47, %v749_v8  ;;  %889 = vmatmul.bf16.gmra.mxu0 %v852_v55  ;;  %1344 = vpow2.f32 %v328_v43  ;;  %v854_v63 = vpack.c.bf16 %v514_v2, %v506_v23 }
  0x9c   : > { %v806_v6 = vmul.f32 %v1335_v45, %v798_v44  ;;  %908 = vmatmul.bf16.gmra.mxu1 %v853_v59  ;;  %v344_v54 = vmul.f32 1.442695, %v300_v41  ;;  %v360_v7 = vmul.f32 1.442695, %v308_v19  ;;  %v855_v4 = vpack.c.bf16 %v1894_v5, %v1890_v10 }
  0x9d   : > { %v775_v0 = vadd.f32 %v774_v24, %v773_v49  ;;  %v751_v16 = vadd.f32 %v1885_v46, %v750_v1  ;;  %v376_v25 = vmul.f32 1.442695, %v316_v34  ;;  %927 = vmatmul.bf16.gmra.mxu2 %v854_v63  ;;  %v229_v3 = vsub.f32 %v1849_v33, %v1600_v11 }
  0x9e   : > { %v1343_v31 = vpop.eup %1342  ;;  %v830_v56 = vmul.f32 %v1814_v12, %v806_v6  ;;  %v838_v18 = vmul.f32 %v1818_v30, %v806_v6  ;;  %v814_v37 = vmul.f32 %v1808_v27, %v806_v6  ;;  %v822_v28 = vmul.f32 %v1811_v62, %v806_v6 }
  0x9f   : > { %v788_v32 = vmul.f32 %v1343_v31, %v748_v60  ;;  %1346 = vrcp.f32 %v775_v0  ;;  %v752_v26 = vrot.slane %v751_v16, 4  ;;  %v237_v41 = vsub.f32 %v1849_v33, %v1604_v13 }
  0xa0   : > { %v874_v36 = vpack.c.bf16 %v838_v18, %v830_v56  ;;  %v866_v39 = vpack.c.bf16 %v822_v28, %v814_v37  ;;  %1348 = vpow2.f32 %v344_v54  ;;  %v245_v27 = vsub.f32 %v1849_v33, %v1606_v14 }
  0xa1   : > { %v1907_v12 = vpop.eup %1344  ;;  %v796_v30 = vsub.f32 2.0, %v788_v32  ;;  %v753_v19 = vadd.f32 %v752_v26, %v751_v16  ;;  %1350 = vpow2.f32 %v360_v7  ;;  %v253_v62 = vsub.f32 %v1849_v33, %v1608_v15 }
  0xa2   : > { %996 = vmatpush.bf16.xpose.msrb.mxu2 %v874_v36  ;;  %1352 = vpow2.f32 %v376_v25  ;;  %v261_v60 = vmul.f32 %v229_v3, %v229_v3  ;;  %v269_v34 = vmul.f32 %v237_v41, %v237_v41  ;;  %v277_v50 = vmul.f32 %v245_v27, %v245_v27 }
  0xa3   : > { %v804_v43 = vmul.f32 %v1343_v31, %v796_v30  ;;  %v754_v45 = vrot.slane %v753_v19, 2  ;;  %v206_v29 = vperm.slane %v1767_v20, 4  ;;  %v285_v51 = vmul.f32 %v253_v62, %v253_v62 }
  0xa4   : > { %v293_v53 = vmul.f32 -480.5, %v261_v60  ;;  %v301_v38 = vmul.f32 -480.5, %v269_v34  ;;  %v207_v57 = vperm.slane %v1767_v20, 6  ;;  %v309_v2 = vmul.f32 -480.5, %v277_v50 }
  0xa5   : > { %v1347_v58 = vpop.eup %1346  ;;  %v828_v49 = vmul.f32 %v1833_v40, %v804_v43  ;;  %v836_v8 = vmul.f32 %v1837_v61, %v804_v43  ;;  %v755_v55 = vadd.f32 %v754_v45, %v753_v19  ;;  %v812_v33 = vmul.f32 %v1828_v35, %v804_v43 }
  0xa6   : > { %v1918_v23 = vpop.eup %1348  ;;  %v791_v44 = vmul.f32 %v1347_v58, %v775_v0  ;;  %v820_v59 = vmul.f32 %v1831_v48, %v804_v43  ;;  %v317_v10 = vmul.f32 -480.5, %v285_v51  ;;  %v330_v40 = vmul.f32 1.442695, %v293_v53 }
  0xa7   : > { %v1921_v24 = vpop.eup %1350  ;;  %v872_v1 = vpack.c.bf16 %v836_v8, %v828_v49  ;;  %v756_v5 = vrot.slane %v755_v55, 1  ;;  %v420_v20 = vadd.f32 %v1918_v23, %v1907_v12  ;;  %v346_v63 = vmul.f32 1.442695, %v301_v38 }
  0xa8   : > { %v1925_v6 = vpop.eup %1352  ;;  %v799_v61 = vsub.f32 2.0, %v791_v44  ;;  %1354 = vpow2.f32 %v330_v40  ;;  %v362_v48 = vmul.f32 1.442695, %v309_v2  ;;  %v378_v0 = vmul.f32 1.442695, %v317_v10 }
  0xa9   : > { %958 = vmatpush.bf16.xpose.msrb.mxu0 %v872_v1  ;;  %v757_v35 = vadd.f32 %v756_v5, %v755_v55  ;;  %946 = vmatmul.bf16.gmra.mxu3 %v855_v4  ;;  %v421_v54 = vadd.f32 %v1921_v24, %v420_v20  ;;  %1356 = vpow2.f32 %v346_v63  ;;  %v222_v16 = vperm.slane %v206_v29, 0 }
  0xaa   : > { %v807_v7 = vmul.f32 %v1347_v58, %v799_v61  ;;  %997 = vmatpush.bf16.xpose.msrb.mxu2 %v866_v39  ;;  %v864_v25 = vpack.c.bf16 %v820_v59, %v812_v33  ;;  %v223_v56 = vperm.slane %v207_v57, 0 }
  0xab   : > { %1358 = vrcp.f32 %v757_v35  ;;  %v422_v31 = vadd.f32 %v1925_v6, %v421_v54  ;;  %v230_v26 = vsub.f32 %v222_v16, %v1600_v11  ;;  %v238_v3 = vsub.f32 %v222_v16, %v1604_v13 }
  0xac   : > { %v831_v18 = vmul.f32 %v1854_v9, %v807_v7  ;;  %v839_v37 = vmul.f32 %v1859_v52, %v807_v7  ;;  %v815_v4 = vmul.f32 %v1847_v17, %v807_v7  ;;  %v823_v28 = vmul.f32 %v1851_v21, %v807_v7 }
  0xad   : > { %v423_v32 = vrot.slane %v422_v31, 4  ;;  %1360 = vpow2.f32 %v362_v48  ;;  %v246_v41 = vsub.f32 %v222_v16, %v1606_v14  ;;  %v254_v52 = vsub.f32 %v222_v16, %v1608_v15 }
  0xae   : > { %v875_v36 = vpack.c.bf16 %v839_v37, %v831_v18  ;;  %v867_v39 = vpack.c.bf16 %v823_v28, %v815_v4  ;;  %1362 = vpow2.f32 %v378_v0  ;;  %v1936_v30 = vpop.eup %1354  ;;  %v262_v19 = vmul.f32 %v230_v26, %v230_v26 }
  0xaf   : > { %v424_v9 = vadd.f32 %v423_v32, %v422_v31  ;;  %v270_v17 = vmul.f32 %v238_v3, %v238_v3  ;;  %v1939_v27 = vpop.eup %1356  ;;  %v278_v21 = vmul.f32 %v246_v41, %v246_v41  ;;  %v231_v62 = vsub.f32 %v223_v56, %v1600_v11 }
  0xb0   : > { %1015 = vmatpush.bf16.xpose.msrb.mxu3 %v875_v36  ;;  %v239_v60 = vsub.f32 %v223_v56, %v1604_v13  ;;  %v247_v34 = vsub.f32 %v223_v56, %v1606_v14  ;;  %v429_v50 = vadd.f32 %v1939_v27, %v1936_v30  ;;  %v286_v29 = vmul.f32 %v254_v52, %v254_v52 }
  0xb1   : > { %v1359_v43 = vpop.eup %1358  ;;  %959 = vmatpush.bf16.xpose.msrb.mxu0 %v864_v25  ;;  %v425_v45 = vrot.slane %v424_v9, 2  ;;  %v294_v51 = vmul.f32 -480.5, %v262_v19  ;;  %v302_v38 = vmul.f32 -480.5, %v270_v17  ;;  %v310_v57 = vmul.f32 -480.5, %v278_v21 }
  0xb2   : > { %v789_v53 = vmul.f32 %v1359_v43, %v757_v35  ;;  %v255_v58 = vsub.f32 %v223_v56, %v1608_v15  ;;  %v318_v8 = vmul.f32 -480.5, %v286_v29  ;;  %v263_v55 = vmul.f32 %v231_v62, %v231_v62 }
  0xb3   : > { %v1947_v49 = vpop.eup %1360  ;;  %v426_v11 = vadd.f32 %v425_v45, %v424_v9  ;;  %v332_v13 = vmul.f32 1.442695, %v294_v51  ;;  %v348_v59 = vmul.f32 1.442695, %v302_v38  ;;  %v364_v2 = vmul.f32 1.442695, %v310_v57 }
  0xb4   : > { %v1949_v14 = vpop.eup %1362  ;;  %v797_v33 = vsub.f32 2.0, %v789_v53  ;;  %v430_v44 = vadd.f32 %v1947_v49, %v429_v50  ;;  %v380_v1 = vmul.f32 1.442695, %v318_v8  ;;  %v271_v5 = vmul.f32 %v239_v60, %v239_v60 }
  0xb5   : > { %v427_v10 = vrot.slane %v426_v11, 1  ;;  %1364 = vpow2.f32 %v332_v13  ;;  %v279_v40 = vmul.f32 %v247_v34, %v247_v34  ;;  %v287_v63 = vmul.f32 %v255_v58, %v255_v58 }
  0xb6   : > { %v805_v20 = vmul.f32 %v1359_v43, %v797_v33  ;;  %v431_v15 = vadd.f32 %v1949_v14, %v430_v44  ;;  %1366 = vpow2.f32 %v348_v59  ;;  %v295_v35 = vmul.f32 -480.5, %v263_v55 }
  0xb7   : > { %v428_v61 = vadd.f32 %v427_v10, %v426_v11  ;;  %1368 = vpow2.f32 %v364_v2  ;;  %v303_v0 = vmul.f32 -480.5, %v271_v5  ;;  %v311_v16 = vmul.f32 -480.5, %v279_v40 }
  0xb8   : > { %v829_v54 = vmul.f32 %v1879_v47, %v805_v20  ;;  %v837_v48 = vmul.f32 %v1885_v46, %v805_v20  ;;  %1016 = vmatpush.bf16.xpose.msrb.mxu3 %v867_v39  ;;  %v432_v7 = vrot.slane %v431_v15, 4  ;;  %v319_v31 = vmul.f32 -480.5, %v287_v63 }
  0xb9   : > { %1370 = vrcp.f32 %v428_v61  ;;  %v334_v37 = vmul.f32 1.442695, %v295_v35  ;;  %v350_v4 = vmul.f32 1.442695, %v303_v0  ;;  %v366_v28 = vmul.f32 1.442695, %v311_v16 }
  0xba   : > { %v873_v25 = vpack.c.bf16 %v837_v48, %v829_v54  ;;  %1372 = vpow2.f32 %v380_v1  ;;  %v433_v18 = vadd.f32 %v432_v7, %v431_v15  ;;  %v813_v47 = vmul.f32 %v1867_v42, %v805_v20 }
  0xbb   : > { %v1955_v56 = vpop.eup %1364  ;;  %v821_v46 = vmul.f32 %v1873_v22, %v805_v20  ;;  %v382_v26 = vmul.f32 1.442695, %v319_v31  ;;  %1374 = vpow2.f32 %v334_v37 }
  0xbc   : > { %v1957_v32 = vpop.eup %1366  ;;  %977 = vmatpush.bf16.xpose.msrb.mxu1 %v873_v25  ;;  %v434_v36 = vrot.slane %v433_v18, 2  ;;  %1376 = vpow2.f32 %v350_v4 }
  0xbd   : > { %v1961_v3 = vpop.eup %1368  ;;  %v438_v39 = vadd.f32 %v1957_v32, %v1955_v56  ;;  %1378 = vpow2.f32 %v366_v28  ;;  %v865_v17 = vpack.c.bf16 %v821_v46, %v813_v47 }
  0xbe   : > { %v435_v9 = vadd.f32 %v434_v36, %v433_v18  ;;  %1380 = vpow2.f32 %v382_v26 }
  0xbf   : > { %v1371_v41 = vpop.eup %1370  ;;  %v439_v52 = vadd.f32 %v1961_v3, %v438_v39 }
  0xc0   : > { %v1966_v19 = vpop.eup %1372  ;;  %v468_v42 = vmul.f32 %v1371_v41, %v428_v61  ;;  %v436_v22 = vrot.slane %v435_v9, 1 }
  0xc1   : > { %v440_v21 = vadd.f32 %v1966_v19, %v439_v52  ;;  %v1375_v60 = vpop.eup %1374 }
  0xc2   : > { %v476_v62 = vsub.f32 2.0, %v468_v42  ;;  %v437_v34 = vadd.f32 %v436_v22, %v435_v9  ;;  %v1377_v45 = vpop.eup %1376 }
  0xc3   : > { %v441_v43 = vrot.slane %v440_v21, 4  ;;  %v1379_v29 = vpop.eup %1378  ;;  %v447_v53 = vadd.f32 %v1377_v45, %v1375_v60 }
  0xc4   : > { %978 = vmatpush.bf16.xpose.msrb.mxu1 %v865_v17  ;;  %v484_v50 = vmul.f32 %v1371_v41, %v476_v62  ;;  %1382 = vrcp.f32 %v437_v34  ;;  %v1381_v38 = vpop.eup %1380 }
  0xc5   : > { %v442_v51 = vadd.f32 %v441_v43, %v440_v21  ;;  %v448_v8 = vadd.f32 %v1379_v29, %v447_v53 }
  0xc6   : > { %v492_v57 = vmul.f32 %v1907_v12, %v484_v50  ;;  %v500_v58 = vmul.f32 %v1918_v23, %v484_v50  ;;  %v508_v63 = vmul.f32 %v1921_v24, %v484_v50  ;;  %v516_v35 = vmul.f32 %v1925_v6, %v484_v50 }
  0xc7   : > { %v443_v11 = vrot.slane %v442_v51, 2  ;;  %v449_v33 = vadd.f32 %v1381_v38, %v448_v8 }
  0xc8   : > { %v848_v13 = vpack.c.bf16 %v500_v58, %v492_v57  ;;  %v856_v25 = vpack.c.bf16 %v516_v35, %v508_v63 }
  0xc9   : > { %v444_v55 = vadd.f32 %v443_v11, %v442_v51  ;;  %v450_v2 = vrot.slane %v449_v33, 4 }
  0xca   : > { %960 = vmatmul.bf16.vlgmr.msrb.gmra.mxu0 %v848_v13  ;;  %v1383_v44 = vpop.eup %1382 }
  0xcb   : > { %v445_v59 = vrot.slane %v444_v55, 1  ;;  %v469_v10 = vmul.f32 %v1383_v44, %v437_v34  ;;  %v451_v5 = vadd.f32 %v450_v2, %v449_v33 }
  0xcd   : > { %v446_v1 = vadd.f32 %v445_v59, %v444_v55  ;;  %v477_v20 = vsub.f32 2.0, %v469_v10  ;;  %v452_v15 = vrot.slane %v451_v5, 2 }
  0xcf   : > { %1384 = vrcp.f32 %v446_v1  ;;  %v485_v40 = vmul.f32 %v1383_v44, %v477_v20  ;;  %v453_v61 = vadd.f32 %v452_v15, %v451_v5 }
  0xd1   : > { %v493_v12 = vmul.f32 %v1936_v30, %v485_v40  ;;  %v501_v23 = vmul.f32 %v1939_v27, %v485_v40  ;;  %v454_v54 = vrot.slane %v453_v61, 1  ;;  %v509_v6 = vmul.f32 %v1947_v49, %v485_v40 }
  0xd2   : > { %v517_v28 = vmul.f32 %v1949_v14, %v485_v40 }
  0xd3   : > { %v849_v48 = vpack.c.bf16 %v501_v23, %v493_v12  ;;  %v455_v0 = vadd.f32 %v454_v54, %v453_v61 }
  0xd4   : > { %v857_v26 = vpack.c.bf16 %v517_v28, %v509_v6 }
  0xd5   : > { %v1385_v7 = vpop.eup %1384  ;;  %979 = vmatmul.bf16.vlgmr.msrb.gmra.mxu1 %v849_v48  ;;  %1386 = vrcp.f32 %v455_v0 }
  0xd6   : > { %v470_v16 = vmul.f32 %v1385_v7, %v446_v1 }
  0xd8   : > { %v478_v31 = vsub.f32 2.0, %v470_v16 }
  0xda   : > { %v486_v18 = vmul.f32 %v1385_v7, %v478_v31  ;;  %965 = vmatmul.bf16.gmra.mxu0 %v856_v25 }
  0xdb   : > { %v1387_v27 = vpop.eup %1386 }
  0xdc   : > { %v494_v37 = vmul.f32 %v1955_v56, %v486_v18  ;;  %v502_v30 = vmul.f32 %v1957_v32, %v486_v18  ;;  %v471_v24 = vmul.f32 %v1387_v27, %v455_v0  ;;  %v510_v56 = vmul.f32 %v1961_v3, %v486_v18 }
  0xdd   : > { %v518_v32 = vmul.f32 %v1966_v19, %v486_v18  ;;  %v1502_v3 = vmov 0.0  }
  0xde   : > { %v850_v4 = vpack.c.bf16 %v502_v30, %v494_v37  ;;  %v479_v47 = vsub.f32 2.0, %v471_v24  ;;  %171 = vst.msk [vmem:[%s1982_s15] sm:$0xff] %vm170_vm0, %v1502_v3 }
  0xdf   : > { %v858_v9 = vpack.c.bf16 %v518_v32, %v510_v56  ;;  %172 = vst.msk [vmem:[%s1982_s15 + $0x8] sm:$0xff] %vm170_vm0, %v1502_v3 }
  0xe0   : > { %998 = vmatmul.bf16.vlgmr.msrb.gmra.mxu2 %v850_v4  ;;  %v487_v46 = vmul.f32 %v1387_v27, %v479_v47  ;;  %173 = vst.msk [vmem:[%s1982_s15 + $0x10] sm:$0xff] %vm170_vm0, %v1502_v3 }
  0xe1   : > { %174 = vst.msk [vmem:[%s1982_s15 + $0x18] sm:$0xff] %vm170_vm0, %v1502_v3 }
  0xe2   : > { %v495_v36 = vmul.f32 %v1375_v60, %v487_v46  ;;  %v503_v39 = vmul.f32 %v1377_v45, %v487_v46  ;;  %v511_v52 = vmul.f32 %v1379_v29, %v487_v46  ;;  %v519_v49 = vmul.f32 %v1381_v38, %v487_v46 }
  0xe4   : > { %v851_v41 = vpack.c.bf16 %v503_v39, %v495_v36  ;;  %v859_v17 = vpack.c.bf16 %v519_v49, %v511_v52 }
  0xe5   : > { %984 = vmatmul.bf16.gmra.mxu1 %v857_v26  ;;  %v840_v12 = vld [vmem:[%s1982_s15] sm:$0xff] }
  0xe6   : > { %1017 = vmatmul.bf16.vlgmr.msrb.gmra.mxu3 %v851_v41  ;;  %v841_v30 = vld [vmem:[%s1982_s15 + $0x8] sm:$0xff] }
  0xe7   : > { %v842_v41 = vld [vmem:[%s1982_s15 + $0x10] sm:$0xff] }
  0xef   : > { %v885_v14 = vpop.f32.mrf.mxu0 }
  0xf0   : > { %1003 = vmatmul.bf16.gmra.mxu2 %v858_v9 }
  0xf6   : > { %1022 = vmatmul.bf16.gmra.mxu3 %v859_v17 }
  0xf7   : > { %v887_v21 = vpop.f32.mrf.mxu0 }
  0xf9   : > { %v904_v42 = vpop.f32.mrf.mxu1 }
  0xfa   : > { %v905_v58 = vadd.f32 %v904_v42, %v885_v14  ;;  %v843_v42 = vld [vmem:[%s1982_s15 + $0x18] sm:$0xff] }
 0x101   : > { %v906_v62 = vpop.f32.mrf.mxu1 }
 0x102   : > { %v907_v33 = vadd.f32 %v906_v62, %v887_v21 }
 0x109   : > { %v923_v22 = vpop.f32.mrf.mxu2 }
 0x10a   : > { %v924_v11 = vadd.f32 %v923_v22, %v905_v58 }
 0x111   : > { %v925_v34 = vpop.f32.mrf.mxu2 }
 0x112   : > { %v926_v10 = vadd.f32 %v925_v34, %v907_v33 }
 0x118   : > { %v890_v43 = vpop.f32.mrf.mxu0 }
 0x119   : > { %v909_v19 = vpop.f32.mrf.mxu1 }
 0x11a   : > { %v910_v40 = vadd.f32 %v909_v19, %v890_v43 }
 0x11c   : > { %v942_v60 = vpop.f32.mrf.mxu3 }
 0x11d   : > { %v943_v13 = vadd.f32 %v942_v60, %v924_v11 }
 0x120   : > { %v928_v50 = vpop.f32.mrf.mxu2  ;;  %v892_v29 = vpop.f32.mrf.mxu0 }
 0x121   : > { %v911_v51 = vpop.f32.mrf.mxu1  ;;  %v929_v35 = vadd.f32 %v928_v50, %v910_v40 }
 0x122   : > { %v912_v31 = vadd.f32 %v911_v51, %v892_v29 }
 0x124   : > { %v944_v45 = vpop.f32.mrf.mxu3 }
 0x125   : > { %v945_v5 = vadd.f32 %v944_v45, %v926_v10 }
 0x128   : > { %v930_v38 = vpop.f32.mrf.mxu2 }
 0x129   : > { %v931_v24 = vadd.f32 %v930_v38, %v912_v31 }
 0x12c   : > { %v947_v53 = vpop.f32.mrf.mxu3 }
 0x12d   : > { %v948_v16 = vadd.f32 %v947_v53, %v929_v35 }
 0x134   : > { %v949_v55 = vpop.f32.mrf.mxu3 }
 0x135   : > { %v950_v26 = vadd.f32 %v949_v55, %v931_v24 }
 0x147   : > { %v961_v57 = vpop.f32.mrf.mxu0 }
 0x148   : > { %v962_v44 = vadd.f32 %v961_v57, %v943_v13 }
 0x14f   : > { %v963_v2 = vpop.f32.mrf.mxu0 }
 0x150   : > { %v964_v61 = vadd.f32 %v963_v2, %v945_v5 }
 0x152   : > { %v980_v8 = vpop.f32.mrf.mxu1 }
 0x153   : > { %v981_v1 = vadd.f32 %v980_v8, %v962_v44 }
 0x157   : > { %v966_v48 = vpop.f32.mrf.mxu0 }
 0x158   : > { %v967_v18 = vadd.f32 %v966_v48, %v948_v16 }
 0x15a   : > { %v982_v15 = vpop.f32.mrf.mxu1 }
 0x15b   : > { %v983_v0 = vadd.f32 %v982_v15, %v964_v61 }
 0x15f   : > { %v968_v46 = vpop.f32.mrf.mxu0 }
 0x160   : > { %v969_v39 = vadd.f32 %v968_v46, %v950_v26 }
 0x162   : > { %v985_v37 = vpop.f32.mrf.mxu1 }
 0x163   : > { %v999_v59 = vpop.f32.mrf.mxu2  ;;  %v986_v47 = vadd.f32 %v985_v37, %v967_v18 }
 0x164   : > { %v1000_v20 = vadd.f32 %v999_v59, %v981_v1 }
 0x169   : > { %v1018_v23 = vpop.f32.mrf.mxu3 }
 0x16a   : > { %v1019_v54 = vadd.f32 %v1018_v23, %v1000_v20  ;;  %v987_v9 = vpop.f32.mrf.mxu1 }
 0x16b   : > { %v1001_v63 = vpop.f32.mrf.mxu2  ;;  %v988_v17 = vadd.f32 %v987_v9, %v969_v39 }
 0x16c   : > { %v1028_v7 = vadd.f32 %v1019_v54, %v840_v12  ;;  %v1002_v25 = vadd.f32 %v1001_v63, %v983_v0 }
 0x16e   : > { %1033 = vst.msk [vmem:[%s1982_s15] sm:$0xff] %vm170_vm0, %v1028_v7 }
 0x171   : > { %v1020_v27 = vpop.f32.mrf.mxu3 }
 0x172   : > { %v1021_v6 = vadd.f32 %v1020_v27, %v1002_v25 }
 0x173   : > { %v1004_v4 = vpop.f32.mrf.mxu2 }
 0x174   : > { %v1029_v28 = vadd.f32 %v1021_v6, %v841_v30  ;;  %v1005_v36 = vadd.f32 %v1004_v4, %v986_v47 }
 0x176   : > { %1034 = vst.msk [vmem:[%s1982_s15 + $0x8] sm:$0xff] %vm170_vm0, %v1029_v28 }
 0x179   : > { %v1023_v56 = vpop.f32.mrf.mxu3 }
 0x17a   : > { %v1024_v32 = vadd.f32 %v1023_v56, %v1005_v36 }
 0x17b   : > { %v1006_v52 = vpop.f32.mrf.mxu2 }
 0x17c   : > { %v1030_v49 = vadd.f32 %v1024_v32, %v842_v41  ;;  %v1007_v14 = vadd.f32 %v1006_v52, %v988_v17 }
 0x17e   : > { %1035 = vst.msk [vmem:[%s1982_s15 + $0x10] sm:$0xff] %vm170_vm0, %v1030_v49 }
 0x181   : > { %v1025_v22 = vpop.f32.mrf.mxu3 }
 0x182   : > { %v1026_v21 = vadd.f32 %v1025_v22, %v1007_v14 }
 0x184   : > { %v1031_v62 = vadd.f32 %v1026_v21, %v843_v42 }
 0x186   : > { %1036 = vst.msk [vmem:[%s1982_s15 + $0x18] sm:$0xff] %vm170_vm0, %v1031_v62 }
 0x187   : > { %1445 = shalt.err (!%p1442_p13)
}
 0x188   : > { %s1503_s3 = smov 128   ;;  %s1504_s4 = smov 8  }
 0x189   : > { %1165 = dma.vmem_to_hbm [thread:$0]  (%p1566_p9), %s1053_s23, 512, %s1055_s24, %s1038_s9, %s1503_s3, %s1503_s3, %s1504_s4  }
 0x18a PF: > { %s1069_s5 = sand.u32 1, %s1480_s6   ;;  %p1172_p0 = pnand %p1149_p12, %p1573_p11 }
 0x18b   : > { %s1070_s12 = scalar_lea.sflag [#allocation4], %s1069_s5 }
 0x18c   : > { %p1173_p1 = pneg %p1172_p0 }
 0x18e   : > { %1475 = dma.done.wait (%p1173_p1), %s1070_s12, 512  }
 0x18f   : > { %1477 = vsyncadd (%p1173_p1), %s1070_s12, 4294966784  ;;  %s17_s11 = sadd.s32 1, %s1500_s11   ;;  %s2049_s6 = smov %s1484_s7 }
 0x190   : > { %p14_p2 = scmp.ge.s32.totalorder %s17_s11, 4   ;;  %s2050_s7 = smov %s1488_s8 }
 0x191   : > { %s2051_s8 = smov %s1571_s20  ;;  %s2052_s9 = smov %s1496_s10 }
 0x192   : > { %s2053_s10 = smov %s2055_s14  ;;  %16 = sbr.rel (!%p14_p2) target bundleno = 6 (0x6), region = 73 }
 0x197   :  { %1076 = vsyncpa [#allocation3], 1 }
 0x198   :  { %1078 = vsyncpa [#allocation3 + $0x1], 1 }
 0x199   :  { %1079 = vsyncpa [#allocation4], 1 }
 0x19a   :  { %1081 = vsyncpa [#allocation4 + $0x1], 1 }

</bundles_post_ra>
